<compile_context>
chip_gen: v5e
topology: v5e:2x2
jax: 0.10.0
libtpu: 0.0.40
codegen_flags: <defaults>
</compile_context>

<pallas_src>
from functools import partial

import jax
import jax.numpy as jnp
from jax.experimental import pallas as pl
from jax.experimental.pallas import tpu as pltpu


def _round_up(x, m):
    return ((x + m - 1) // m) * m


def _cdiv(a, b):
    return (a + b - 1) // b


def stl_attention_kernel(num_heads, token_num, x_ref, ws_ref, rhs_ref, out_ref):
    """Per-tile STL forward.

    x_ref   : [tile, d_q]    batch tile of reference-encoder features
    ws_ref  : [d_q, H*T]     precomputed scale * (Wq @ Kblk)   (resident)
    rhs_ref : [H*T, 2U]      precomputed [Vblk | head_mask]    (resident)
    out_ref : [tile, U]      style embeddings for this tile
    """
    H, T = num_heads, token_num
    U = out_ref.shape[-1]

    # Scores for all heads in one lane-dense MXU matmul: [tile, H*T].
    s = jnp.dot(x_ref[...], ws_ref[...], preferred_element_type=jnp.float32)

    # Per-head numerically stable softmax numerator on lane slices
    # (no full-width broadcast of the max is materialized).
    p_parts = []
    for h in range(H):
        sh = s[:, h * T:(h + 1) * T]
        p_parts.append(jnp.exp(sh - jnp.max(sh, axis=-1, keepdims=True)))
    p = jnp.concatenate(p_parts, axis=-1)                        # [tile, H*T]

    # Fused numerator / denominator: one matmul against [H*T, 2U].
    nd = jnp.dot(p, rhs_ref[...], preferred_element_type=jnp.float32)
    num = nd[:, :U]
    den = nd[:, U:]

    # Exact normalization; single lane-dense store of the full output block.
    out_ref[...] = num / den


def stl_forward(inputs, embed, wq_t, wk_t, wv_t, *, num_heads, key_dim,
                tile_n=4096):
    """inputs: [N, ref_enc_gru_size]; returns style_embed [N, 1, num_units]."""
    N, d_q = inputs.shape
    T, d_k = embed.shape
    U = wq_t.shape[1]
    H = num_heads
    assert U % H == 0
    hd = U // H
    # PyTorch scales by the *full* key feature dim (d_k), not per-head dim.
    scale = 1.0 / (float(key_dim) ** 0.5)

    # ---- batch-invariant precompute (hoisted out of the serial grid loop) --
    keys = jnp.tanh(embed)                                       # [T, d_k]
    k = keys @ wk_t                                              # [T, U]
    v = keys @ wv_t                                              # [T, U]

    # Block-diagonal K expansion: (q @ kblk)[n, h*T + t] = <q_h[n], k_h[t]>.
    kT = k.T                                                     # [U, T]
    k_rep = jnp.tile(kT, (1, H))                                 # [U, H*T]
    r_hid = jax.lax.broadcasted_iota(jnp.int32, (U, H * T), 0) // hd
    c_hid = jax.lax.broadcasted_iota(jnp.int32, (U, H * T), 1) // T
    kblk = jnp.where(r_hid == c_hid, k_rep, 0.0)                 # [U, H*T]

    # Fold Q projection and the score scale into one weight: [d_q, H*T].
    ws = scale * (wq_t @ kblk)

    # Block-diagonal V + head mask, fused into a single [H*T, 2U] RHS.
    v_rep = jnp.tile(v, (H, 1))                                  # [H*T, U]
    vr_hid = jax.lax.broadcasted_iota(jnp.int32, (H * T, U), 0) // T
    vc_hid = jax.lax.broadcasted_iota(jnp.int32, (H * T, U), 1) // hd
    head_mask = vr_hid == vc_hid
    vblk = jnp.where(head_mask, v_rep, 0.0)                      # [H*T, U]
    rhs = jnp.concatenate([vblk, head_mask.astype(jnp.float32)], axis=1)

    # ---- batch tiling: large tiles (amortize per-step overhead), balanced
    # steps, and >= 2 (even) steps when N is large for v7x's two TCs. --------
    tile_max = max(8, _round_up(min(tile_n, max(N, 1)), 8))
    n_steps = max(1, _cdiv(max(N, 1), tile_max))
    if N >= 64:
        n_steps = max(n_steps, 2)
        if n_steps % 2:
            n_steps += 1
    tile = _round_up(_cdiv(max(N, 1), n_steps), 8)
    n_pad = tile * n_steps
    x = inputs if n_pad == N else jnp.pad(inputs, ((0, n_pad - N), (0, 0)))

    out = pl.pallas_call(
        partial(stl_attention_kernel, H, T),
        out_shape=jax.ShapeDtypeStruct((n_pad, U), jnp.float32),
        grid_spec=pltpu.PrefetchScalarGridSpec(
            num_scalar_prefetch=0,
            grid=(n_steps,),
            in_specs=[
                pl.BlockSpec((tile, d_q), lambda i: (i, 0)),     # batch-tiled
                pl.BlockSpec((d_q, H * T), lambda i: (0, 0)),    # resident
                pl.BlockSpec((H * T, 2 * U), lambda i: (0, 0)),  # resident
            ],
            out_specs=pl.BlockSpec((tile, U), lambda i: (i, 0)),
        ),
        compiler_params=pltpu.CompilerParams(
            dimension_semantics=("parallel",)),
    )(x, ws, rhs)
    return out[:N, None, :]   # [N, 1, num_units]


def stl_reference(inputs, embed, wq_t, wk_t, wv_t, *, num_heads, key_dim):
    """Pure-JAX reference mirroring the PyTorch STL / MultiHeadAttention."""
    keys = jnp.tanh(embed)                       # [T, d_k]
    q = inputs @ wq_t                            # [N, U]
    k = keys @ wk_t                              # [T, U]
    v = keys @ wv_t                              # [T, U]
    N, U = q.shape
    H = num_heads
    hd = U // H
    qh = q.reshape(N, H, hd)
    kh = k.reshape(-1, H, hd)
    vh = v.reshape(-1, H, hd)
    scores = jnp.einsum("nhd,thd->nht", qh, kh) / (float(key_dim) ** 0.5)
    attn = jax.nn.softmax(scores, axis=-1)
    out = jnp.einsum("nht,thd->nhd", attn, vh).reshape(N, U)
    return out[:, None, :]                       # [N, 1, U]


if __name__ == "__main__":
    # Small shapes consistent with STL.__init__ / forward:
    N = 2                      # batch
    token_num = 8              # T_k
    token_embedding_size = 32  # num_units
    num_heads = 4
    ref_enc_gru_size = 16      # d_q
    d_q = ref_enc_gru_size
    d_k = token_embedding_size // num_heads   # 8

    key = jax.random.PRNGKey(0)
    k_in, k_emb, k_wq, k_wk, k_wv, k_big = jax.random.split(key, 6)

    inputs = jax.random.normal(k_in, (N, d_q), dtype=jnp.float32)
    # init.normal_(embed, mean=0, std=0.5)
    embed = 0.5 * jax.random.normal(k_emb, (token_num, d_k), dtype=jnp.float32)
    # nn.Linear weights (synthetic deterministic init), pre-transposed [in, out]
    wq_t = 0.1 * jax.random.normal(k_wq, (d_q, token_embedding_size), dtype=jnp.float32)
    wk_t = 0.1 * jax.random.normal(k_wk, (d_k, token_embedding_size), dtype=jnp.float32)
    wv_t = 0.1 * jax.random.normal(k_wv, (d_k, token_embedding_size), dtype=jnp.float32)

    # Small-batch check (single grid step).
    out = stl_forward(inputs, embed, wq_t, wk_t, wv_t,
                      num_heads=num_heads, key_dim=d_k)
    out = jax.block_until_ready(out)
    ref = stl_reference(inputs, embed, wq_t, wk_t, wv_t,
                        num_heads=num_heads, key_dim=d_k)
    assert out.shape == (N, 1, token_embedding_size), out.shape
    err = jnp.max(jnp.abs(out - ref))
    assert jnp.allclose(out, ref, atol=1e-4, rtol=1e-4), f"max abs err {err}"

    # Larger-batch check exercising the N-tiled "parallel" grid + padding.
    N_big = 1000
    x_big = jax.random.normal(k_big, (N_big, d_q), dtype=jnp.float32)
    out_big = jax.block_until_ready(
        stl_forward(x_big, embed, wq_t, wk_t, wv_t,
                    num_heads=num_heads, key_dim=d_k))
    ref_big = stl_reference(x_big, embed, wq_t, wk_t, wv_t,
                            num_heads=num_heads, key_dim=d_k)
    err_big = jnp.max(jnp.abs(out_big - ref_big))
    assert out_big.shape == (N_big, 1, token_embedding_size), out_big.shape
    assert jnp.allclose(out_big, ref_big, atol=1e-4, rtol=1e-4), \
        f"max abs err {err_big}"

    print("KERNEL_OK")
</pallas_src>

<mosaic_0001>
module attributes {stable_mosaic.version = 11 : i64} {
  func.func @stl_attention_kernel(%arg0: i32, %arg1: memref<8x16xf32, #tpu.memory_space<vmem>>, %arg2: memref<16x32xf32, #tpu.memory_space<vmem>>, %arg3: memref<32x64xf32, #tpu.memory_space<vmem>>, %arg4: memref<8x32xf32, #tpu.memory_space<vmem>>) attributes {dimension_semantics = [#tpu.dimension_semantics<parallel>], iteration_bounds = array<i64: 1>, scalar_prefetch = 0 : i64, scratch_operands = 0 : i64, tpu.core_type = #tpu.core_type<tc>, window_params = [{transform_indices = @transform_0, window_bounds = array<i64: 8, 16>}, {pipeline_mode = #tpu.pipeline_mode<synchronous>, transform_indices = @transform_1, window_bounds = array<i64: 16, 32>}, {pipeline_mode = #tpu.pipeline_mode<synchronous>, transform_indices = @transform_2, window_bounds = array<i64: 32, 64>}, {transform_indices = @transform_3, window_bounds = array<i64: 8, 32>}]} {
    %c0 = arith.constant 0 : index
    %c0_0 = arith.constant 0 : index
    %0 = vector.load %arg1[%c0, %c0_0] : memref<8x16xf32, #tpu.memory_space<vmem>>, vector<8x16xf32>
    %c0_1 = arith.constant 0 : index
    %c0_2 = arith.constant 0 : index
    %1 = vector.load %arg2[%c0_1, %c0_2] : memref<16x32xf32, #tpu.memory_space<vmem>>, vector<16x32xf32>
    %cst = arith.constant dense<0.000000e+00> : vector<8x32xf32>
    %2 = tpu.matmul %0, %1, %cst {dimension_numbers = #tpu.dot_dimension_numbers<[1], [0], [0], [1], [0, 0, 1, 1], [], []>} : vector<8x16xf32>, vector<16x32xf32>, vector<8x32xf32> -> vector<8x32xf32>
    %3 = vector.extract_strided_slice %2 {offsets = [0, 0], sizes = [8, 8], strides = [1, 1]} : vector<8x32xf32> to vector<8x8xf32>
    %cst_3 = arith.constant dense<0xFF800000> : vector<8xf32>
    %4 = vector.multi_reduction <maximumf>, %3, %cst_3 [1] : vector<8x8xf32> to vector<8xf32>
    %5 = vector.shape_cast %4 : vector<8xf32> to vector<8x1xf32>
    %6 = vector.broadcast %5 : vector<8x1xf32> to vector<8x8xf32>
    %7 = arith.subf %3, %6 : vector<8x8xf32>
    %8 = math.exp %7 : vector<8x8xf32>
    %9 = vector.extract_strided_slice %2 {offsets = [0, 8], sizes = [8, 8], strides = [1, 1]} : vector<8x32xf32> to vector<8x8xf32>
    %cst_4 = arith.constant dense<0xFF800000> : vector<8xf32>
    %10 = vector.multi_reduction <maximumf>, %9, %cst_4 [1] : vector<8x8xf32> to vector<8xf32>
    %11 = vector.shape_cast %10 : vector<8xf32> to vector<8x1xf32>
    %12 = vector.broadcast %11 : vector<8x1xf32> to vector<8x8xf32>
    %13 = arith.subf %9, %12 : vector<8x8xf32>
    %14 = math.exp %13 : vector<8x8xf32>
    %15 = vector.extract_strided_slice %2 {offsets = [0, 16], sizes = [8, 8], strides = [1, 1]} : vector<8x32xf32> to vector<8x8xf32>
    %cst_5 = arith.constant dense<0xFF800000> : vector<8xf32>
    %16 = vector.multi_reduction <maximumf>, %15, %cst_5 [1] : vector<8x8xf32> to vector<8xf32>
    %17 = vector.shape_cast %16 : vector<8xf32> to vector<8x1xf32>
    %18 = vector.broadcast %17 : vector<8x1xf32> to vector<8x8xf32>
    %19 = arith.subf %15, %18 : vector<8x8xf32>
    %20 = math.exp %19 : vector<8x8xf32>
    %21 = vector.extract_strided_slice %2 {offsets = [0, 24], sizes = [8, 8], strides = [1, 1]} : vector<8x32xf32> to vector<8x8xf32>
    %cst_6 = arith.constant dense<0xFF800000> : vector<8xf32>
    %22 = vector.multi_reduction <maximumf>, %21, %cst_6 [1] : vector<8x8xf32> to vector<8xf32>
    %23 = vector.shape_cast %22 : vector<8xf32> to vector<8x1xf32>
    %24 = vector.broadcast %23 : vector<8x1xf32> to vector<8x8xf32>
    %25 = arith.subf %21, %24 : vector<8x8xf32>
    %26 = math.exp %25 : vector<8x8xf32>
    %27 = tpu.concatenate %8, %14, %20, %26 in 1 : vector<8x8xf32>, vector<8x8xf32>, vector<8x8xf32>, vector<8x8xf32> -> vector<8x32xf32>
    %c0_7 = arith.constant 0 : index
    %c0_8 = arith.constant 0 : index
    %28 = vector.load %arg3[%c0_7, %c0_8] : memref<32x64xf32, #tpu.memory_space<vmem>>, vector<32x64xf32>
    %cst_9 = arith.constant dense<0.000000e+00> : vector<8x64xf32>
    %29 = tpu.matmul %27, %28, %cst_9 {dimension_numbers = #tpu.dot_dimension_numbers<[1], [0], [0], [1], [0, 0, 1, 1], [], []>} : vector<8x32xf32>, vector<32x64xf32>, vector<8x64xf32> -> vector<8x64xf32>
    %30 = vector.extract_strided_slice %29 {offsets = [0, 0], sizes = [8, 32], strides = [1, 1]} : vector<8x64xf32> to vector<8x32xf32>
    %31 = vector.extract_strided_slice %29 {offsets = [0, 32], sizes = [8, 32], strides = [1, 1]} : vector<8x64xf32> to vector<8x32xf32>
    %32 = arith.divf %30, %31 : vector<8x32xf32>
    %c0_10 = arith.constant 0 : index
    %c0_11 = arith.constant 0 : index
    %33 = vector.load %arg4[%c0_10, %c0_11] : memref<8x32xf32, #tpu.memory_space<vmem>>, vector<8x32xf32>
    tpu.vector_store %arg4[%c0_10, %c0_11], %32 {strides = array<i32>} : memref<8x32xf32, #tpu.memory_space<vmem>>, vector<8x32xf32>,
    return
  }
  func.func @transform_0(%arg0: i32) -> (i32, i32) {
    %c0_i32 = arith.constant 0 : i32
    %c0_i32_0 = arith.constant 0 : i32
    return %arg0, %c0_i32 : i32, i32
  }
  func.func @transform_1(%arg0: i32) -> (i32, i32) {
    %c0_i32 = arith.constant 0 : i32
    %c0_i32_0 = arith.constant 0 : i32
    %c0_i32_1 = arith.constant 0 : i32
    return %c0_i32, %c0_i32_0 : i32, i32
  }
  func.func @transform_2(%arg0: i32) -> (i32, i32) {
    %c0_i32 = arith.constant 0 : i32
    %c0_i32_0 = arith.constant 0 : i32
    %c0_i32_1 = arith.constant 0 : i32
    return %c0_i32, %c0_i32_0 : i32, i32
  }
  func.func @transform_3(%arg0: i32) -> (i32, i32) {
    %c0_i32 = arith.constant 0 : i32
    %c0_i32_0 = arith.constant 0 : i32
    return %arg0, %c0_i32 : i32, i32
  }
}

</mosaic_0001>

<bundles_post_ra>
// kernel: tpu_custom_call.1
= control target key start
LH: loop header
LB: loop body
LE: loop exit
PB: predicated region body
PF: predicated region fallthrough
CT: control target
= control target key end

     0   :  { %8 = vsyncpa [#allocation3], 0  ;;  %s351_s0 = inlined_call_operand.hbm [shape: f32[8,16], index: 0, kind: input, shape index: {}]   ;;  %s352_s1 = inlined_call_operand.hbm [shape: f32[16,32], index: 1, kind: input, shape index: {}]   ;;  %s353_s2 = inlined_call_operand.hbm [shape: f32[32,64], index: 2, kind: input, shape index: {}]   ;;  %s354_s3 = inlined_call_operand.hbm [shape: f32[8,32], index: 3, kind: output, shape index: {}]  }
   0x1   :  { %9 = vsyncpa [#allocation6], 0  ;;  %s26_s14 = sshll.u32 %s352_s1, 4  ;;  %s27_s14 = int_to_ptr.hbm [resolvable:$true] %s26_s14 }
   0x2   :  { %10 = vsyncpa [#allocation4], 0  ;;  %s306_s15 = smov [#allocation5]   ;;  %s16_s19 = sshll.u32 %s351_s0, 4  ;;  %s17_s19 = int_to_ptr.hbm [resolvable:$true] %s16_s19 }
   0x3   :  { %s28_s16 = sshll.u32 %s306_s15, 4  ;;  %s307_s20 = smov 128   ;;  %s29_s16 = int_to_ptr.vmem [resolvable:$true] %s28_s16 }
   0x4   :  { %s308_s21 = smov 8   ;;  %s309_s22 = smov [#allocation2]  }
   0x5   :  { %34 = dma.hbm_to_vmem [thread:$0]  %s27_s14, 256, %s29_s16, [#allocation6], %s307_s20, %s307_s20, %s308_s21  }
   0x6   :  { %s18_s23 = sshll.u32 %s309_s22, 4  ;;  %s39_s26 = sshll.u32 %s353_s2, 4  ;;  %s19_s23 = int_to_ptr.vmem [resolvable:$true] %s18_s23  ;;  %s40_s26 = int_to_ptr.hbm [resolvable:$true] %s39_s26 }
   0x7   :  { %21 = dma.hbm_to_vmem [thread:$0]  %s17_s19, 128, %s19_s23, [#allocation3]  }
   0x8   :  { %s310_s1 = smov [#allocation7]  }
   0x9   :  { %s41_s27 = sshll.u32 %s310_s1, 4  ;;  %s42_s27 = int_to_ptr.vmem [resolvable:$true] %s41_s27 }
   0xa   :  { %47 = dma.hbm_to_vmem [thread:$0]  %s40_s26, 512, %s42_s27, [#allocation6], %s307_s20, %s307_s20, %s308_s21  }
   0xb   :  { %300 = dma.done.wait [#allocation3], 128  }
   0xc   :  { %301 = vsyncadd [#allocation3], 4294967168 }
   0xd   :  { %302 = dma.done.wait [#allocation6], 768  }
   0xe   :  { %303 = vsyncadd [#allocation6], 4294966528  ;;  %v62_v0 = vld [vmem:[#allocation5 + $0x8] sm:$0xff]  ;;  %v61_v1 = vld [vmem:[#allocation5] sm:$0xff]  ;;  %vm63_vm0 = vcmask 130048   ;;  %vm101_vm1 = vcmask 195712  }
   0xf   :  { %81 = vmatpush.msra.mxu0 %v62_v0  ;;  %v60_v2 = vld [vmem:[#allocation2] sm:$0xff]  ;;  %vm87_vm2 = vcmask 64512   ;;  %vm108_vm3 = vcmask 261312   ;;  %vm94_vm4 = vcmask 130112   ;;  %v122_v8 = vld [vmem:[#allocation7 + $0x18] sm:$0xff]  ;;  %v121_v9 = vld [vmem:[#allocation7 + $0x10] sm:$0xff] }
  0x10   :  { %139 = vmatpush.msra.mxu1 %v122_v8  ;;  %v120_v10 = vld [vmem:[#allocation7 + $0x8] sm:$0xff]  ;;  %v119_v11 = vld [vmem:[#allocation7] sm:$0xff]  ;;  %vm117_vm5 = vcmask 195584   ;;  %vm123_vm6 = vcmask 261120   ;;  %s311_s0 = smov 96   ;;  %s312_s2 = smov [#allocation8]  }
  0x11   :  { %82 = vmatpush.msra.mxu0 %v61_v1  ;;  %s172_s28 = sshll.u32 %s312_s2, 4  ;;  %s174_s4 = sshll.u32 %s354_s3, 4  ;;  %s173_s28 = int_to_ptr.vmem [resolvable:$true] %s172_s28  ;;  %s175_s4 = int_to_ptr.hbm [resolvable:$true] %s174_s4 }
  0x12   :  { %185 = vmatmul.msk.f32.vlgmr.msra.gmra.mxu0 %vm63_vm0, %v60_v2  ;;  %140 = vmatpush.msra.mxu1 %v121_v9 }
  0x14   :  { %141 = vmatpush.msra.mxu1 %v120_v10 }
  0x16   :  { %142 = vmatpush.msra.mxu1 %v119_v11 }
  0x8f   :  { %v84_v3 = vpop.f32.mrf.mxu0 }
  0x90   :  { %v102_v4 = vsel %vm101_vm1, %v84_v3, -inf  ;;  %v88_v5 = vsel %vm87_vm2, %v84_v3, -inf  ;;  %v109_v6 = vsel %vm108_vm3, %v84_v3, -inf  ;;  %v95_v7 = vsel %vm94_vm4, %v84_v3, -inf }
  0x91   :  { %103 = vmax.xlane.f32.xlu1 %v102_v4  ;;  %89 = vmax.xlane.f32.xlu0 %v88_v5 }
  0x99   :  { %110 = vmax.xlane.f32.xlu1 %v109_v6  ;;  %96 = vmax.xlane.f32.xlu0 %v95_v7 }
 0x104   :  { %v104_v12 = vpop.xlane.xlu1 %103  ;;  %v90_v13 = vpop.xlane.xlu0 %89 }
 0x105   :  { %v91_v14 = vsub.f32 %v84_v3, %v90_v13  ;;  %v105_v15 = vsub.f32 %v84_v3, %v104_v12 }
 0x107   :  { %v92_v18 = vmul.f32 1.442695, %v91_v14  ;;  %v106_v21 = vmul.f32 1.442695, %v105_v15 }
 0x109   :  { %194 = vpow2.f32 %v92_v18 }
 0x10c   :  { %v111_v16 = vpop.xlane.xlu1 %110  ;;  %v97_v17 = vpop.xlane.xlu0 %96 }
 0x10d   :  { %v112_v19 = vsub.f32 %v84_v3, %v111_v16  ;;  %v98_v20 = vsub.f32 %v84_v3, %v97_v17 }
 0x10f   :  { %v99_v22 = vmul.f32 1.442695, %v98_v20  ;;  %v113_v23 = vmul.f32 1.442695, %v112_v19  ;;  %v195_v24 = vpop.eup %194 }
 0x111   :  { %196 = vpow2.f32 %v99_v22 }
 0x112   :  { %198 = vpow2.f32 %v106_v21 }
 0x113   :  { %200 = vpow2.f32 %v113_v23 }
 0x117   :  { %v197_v25 = vpop.eup %196 }
 0x118   :  { %v199_v26 = vpop.eup %198  ;;  %v115_v27 = vsel %vm87_vm2, %v195_v24, %v197_v25 }
 0x119   :  { %v201_v28 = vpop.eup %200  ;;  %v116_v29 = vsel %vm63_vm0, %v115_v27, %v199_v26 }
 0x11a   :  { %v118_v30 = vsel %vm117_vm5, %v116_v29, %v201_v28 }
 0x11b   :  { %186 = vmatmul.msk.f32.vlgmr.msra.gmra.mxu1 %vm123_vm6, %v118_v30 }
 0x198   :  { %v144_v31 = vpop.f32.mrf.mxu1 }
 0x199   :  { %148 = vrot.lane.b32.xlu2 %v144_v31, %s311_s0 }
 0x1f3   :  { %v149_v32 = vpop.permute.xlu2 %148 }
 0x1f4   :  { %202 = vrcp.f32 %v149_v32  ;;  %v162_v36 = vand.u32 2147483648, %v149_v32  ;;  %v160_v38 = vand.u32 2147483647, %v149_v32  ;;  %vm156_vm8 = vweird.f32 %v149_v32 }
 0x1f6   :  { %v163_v40 = vor.u32 1.1754944e-38, %v162_v36  ;;  %vm161_vm10 = vcmp.eq.f32.partialorder %v160_v38, 8.507059e+37 }
 0x1fa   :  { %v203_v33 = vpop.eup %202 }
 0x1fb   :  { %v152_v34 = vmul.f32 %v203_v33, %v149_v32  ;;  %vm157_vm7 = vweird.f32 %v203_v33 }
 0x1fc   :  { %vm158_vm9 = vmor %vm156_vm8, %vm157_vm7 }
 0x1fd   :  { %v153_v35 = vsub.f32 1.0, %v152_v34 }
 0x1ff   :  { %v154_v37 = vmul.f32 %v203_v33, %v153_v35 }
 0x201   :  { %v155_v39 = vadd.f32 %v203_v33, %v154_v37 }
 0x203   :  { %v159_v41 = vsel %vm158_vm9, %v203_v33, %v155_v39 }
 0x204   :  { %v164_v42 = vsel %vm161_vm10, %v163_v40, %v159_v41 }
 0x205   :  { %v165_v43 = vmul.f32 %v164_v42, %v144_v31 }
 0x207   :  { %166 = vst.msk [vmem:[#allocation8] sm:$0xff] %vm123_vm6, %v165_v43 }
 0x208   :  { %177 = dma.vmem_to_hbm [thread:$0]  %s173_s28, 128, %s175_s4, [#allocation4]  }
 0x209   :  { %304 = dma.done.wait [#allocation4], 128  }
 0x20a   :  { %305 = vsyncadd [#allocation4], 4294967168 }
 0x20b   :  { %182 = vsyncpa [#allocation3], 1 }
 0x20c   :  { %183 = vsyncpa [#allocation6], 1 }
 0x20d   :  { %184 = vsyncpa [#allocation4], 1 }

</bundles_post_ra>
